<compile_context>
chip_gen: v7x
topology: tpu7x:2x2x1
jax: 0.10.0
libtpu: 0.0.40
codegen_flags: <defaults>
</compile_context>

<pallas_src>
import functools

import jax
import jax.numpy as jnp
import numpy as np
from jax.experimental import pallas as pl
from jax.experimental.pallas import tpu as pltpu

F32 = jnp.float32
_VMEM = pl.BlockSpec(memory_space=pltpu.MemorySpace.VMEM)
_EPS = 1e-5  # PyTorch nn.LayerNorm default

# Row layout of the packed bias/scale slab b_stack: (9, out_features)
_B_MID, _G0, _BE0, _B1, _G1, _BE1, _B_ATTN, _B_F1, _B_F2 = range(9)
# Row layout of the packed weight slab w_stack: (num_nodes + 3, F, F)
#   rows [0 .. num_nodes-1] : mid_linear1 split chunks (last chunk acts on iud)
#   row  num_nodes          : folded attention  (Wv @ Wo)
#   row  num_nodes + 1      : final MLP layer 1
#   row  num_nodes + 2      : final MLP layer 2


# ----------------------------------------------------------------------------
# Single fused kernel: the entire DownTriangle1 forward
# ----------------------------------------------------------------------------
def _down_triangle_kernel(*refs, num_down):
    iu_ref = refs[0]
    down_refs = refs[1:1 + num_down]
    wm_ref, ws_ref, bs_ref, o_ref = refs[1 + num_down:]

    # One load of the packed bias slab; slices stay in vregs.
    bs = bs_ref[...]
    b_mid, g0, be0 = bs[_B_MID:_B_MID + 1], bs[_G0:_G0 + 1], bs[_BE0:_BE0 + 1]
    b1, g1, be1 = bs[_B1:_B1 + 1], bs[_G1:_G1 + 1], bs[_BE1:_BE1 + 1]
    b_attn = bs[_B_ATTN:_B_ATTN + 1]
    b_f1, b_f2 = bs[_B_F1:_B_F1 + 1], bs[_B_F2:_B_F2 + 1]

    def ln(x, g, b):
        mu = jnp.mean(x, axis=-1, keepdims=True)
        var = jnp.mean((x - mu) ** 2, axis=-1, keepdims=True)
        return (x - mu) * jax.lax.rsqrt(var + _EPS) * g + b

    # input_up_down = Dropout(ReLU(LN(mid_linear(input_up))))   (dropout = id)
    iu = iu_ref[...].astype(jnp.float32)
    iud = jnp.dot(iu, wm_ref[...], preferred_element_type=jnp.float32) + b_mid
    iud = jnp.maximum(ln(iud, g0, be0), 0.0)

    # x_mid = mid_linear1(cat(input_down + [iud], dim=1))
    # implemented as split-weight dots accumulated in f32 (no concat).
    acc = jnp.dot(iud, ws_ref[num_down],
                  preferred_element_type=jnp.float32) + b1
    for i in range(num_down):               # static unroll; stays in vregs
        acc = acc + jnp.dot(down_refs[i][...].astype(jnp.float32), ws_ref[i],
                            preferred_element_type=jnp.float32)
    x_mid = jnp.maximum(ln(acc, g1, be1), 0.0)

    # seq-len-1 self-attention == out_proj(v_proj(x)); projections pre-folded.
    attn = jnp.dot(x_mid, ws_ref[num_down + 1],
                   preferred_element_type=jnp.float32) + b_attn

    # final_transform MLP: Linear -> ReLU -> Linear
    h = attn + iud
    h = jnp.maximum(jnp.dot(h, ws_ref[num_down + 2],
                            preferred_element_type=jnp.float32) + b_f1, 0.0)
    out = jnp.dot(h, ws_ref[num_down + 3],
                  preferred_element_type=jnp.float32) + b_f2
    o_ref[...] = out.astype(o_ref.dtype)


def down_triangle_fwd(params, input_up, input_down, ctx=None):
    # `ctx` is accepted but unused, exactly like the reference forward().
    del ctx
    num_down = len(input_down)                    # static at trace time
    b = input_up.shape[0]
    d_out = params["w_stack"].shape[-1]
    kernel = functools.partial(_down_triangle_kernel, num_down=num_down)
    n_in = 1 + num_down + 3
    return pl.pallas_call(
        kernel,
        out_shape=jax.ShapeDtypeStruct((b, d_out), input_up.dtype),
        in_specs=[_VMEM] * n_in,
        out_specs=_VMEM,
    )(input_up, *input_down,
      params["w_mid"], params["w_stack"], params["b_stack"])


# ----------------------------------------------------------------------------
# Deterministic parameter initialization (weights stored as (in, out)).
# All packing / pre-folding is done once at init time, not per forward.
# ----------------------------------------------------------------------------
class KeyGen:
    def __init__(self, seed=0):
        self._key = jax.random.PRNGKey(seed)
        self._i = 0

    def __call__(self):
        self._i += 1
        return jax.random.fold_in(self._key, self._i)


def _uniform(kg, shape, fan_in):
    bound = 1.0 / np.sqrt(fan_in)
    return jax.random.uniform(kg(), shape, F32, -bound, bound)


def init_down_triangle(seed, in_features, out_features, num_nodes=3):
    kg = KeyGen(seed)
    # mid_linear / mid_norm
    w_mid = _uniform(kg, (in_features, out_features), in_features)
    b_mid = _uniform(kg, (1, out_features), in_features)
    g0 = jnp.ones((1, out_features), F32)
    be0 = jnp.zeros((1, out_features), F32)
    # mid_linear1 (weight pre-split into num_nodes chunks) / mid_norm1
    din1 = out_features * num_nodes
    w1 = _uniform(kg, (din1, out_features), din1).reshape(
        num_nodes, out_features, out_features)
    b1 = _uniform(kg, (1, out_features), din1)
    g1 = jnp.ones((1, out_features), F32)
    be1 = jnp.zeros((1, out_features), F32)
    # mid_attention (seq_len == 1): only v-proj and out-proj matter; pre-fold
    # the two affine maps into one (done in f32 on the host).
    wv = _uniform(kg, (out_features, out_features), out_features)
    bv = _uniform(kg, (1, out_features), out_features)
    wo = _uniform(kg, (out_features, out_features), out_features)
    bo = jnp.zeros((1, out_features), F32)
    w_attn = jnp.dot(wv, wo)
    b_attn = jnp.dot(bv, wo) + bo
    # final_transform MLP: Linear -> ReLU -> Linear
    w_f1 = _uniform(kg, (out_features, out_features), out_features)
    b_f1 = _uniform(kg, (1, out_features), out_features)
    w_f2 = _uniform(kg, (out_features, out_features), out_features)
    b_f2 = _uniform(kg, (1, out_features), out_features)
    # Pack: one weight slab + one bias/scale slab -> fewer tiny DMAs per call.
    w_stack = jnp.concatenate(
        [w1, w_attn[None], w_f1[None], w_f2[None]], axis=0)
    b_stack = jnp.concatenate(
        [b_mid, g0, be0, b1, g1, be1, b_attn, b_f1, b_f2], axis=0)
    return {"w_mid": w_mid, "w_stack": w_stack, "b_stack": b_stack}


# ----------------------------------------------------------------------------
# Pure-JAX reference (same math, no Pallas) for a correctness check
# ----------------------------------------------------------------------------
def down_triangle_ref(params, input_up, input_down, ctx=None):
    del ctx
    ws, bs = params["w_stack"], params["b_stack"]
    num_down = len(input_down)
    out_f = ws.shape[-1]

    def ln(x, g, b):
        mu = jnp.mean(x, axis=-1, keepdims=True)
        var = jnp.mean((x - mu) ** 2, axis=-1, keepdims=True)
        return (x - mu) * jax.lax.rsqrt(var + _EPS) * g + b

    b_mid, g0, be0 = bs[_B_MID:_B_MID + 1], bs[_G0:_G0 + 1], bs[_BE0:_BE0 + 1]
    b1, g1, be1 = bs[_B1:_B1 + 1], bs[_G1:_G1 + 1], bs[_BE1:_BE1 + 1]
    b_attn = bs[_B_ATTN:_B_ATTN + 1]
    b_f1, b_f2 = bs[_B_F1:_B_F1 + 1], bs[_B_F2:_B_F2 + 1]

    iud = jnp.maximum(ln(input_up @ params["w_mid"] + b_mid, g0, be0), 0.0)
    x_cat = jnp.concatenate(list(input_down) + [iud], axis=1)
    w1_full = ws[:num_down + 1].reshape(-1, out_f)
    x_mid = jnp.maximum(ln(x_cat @ w1_full + b1, g1, be1), 0.0)
    attn = x_mid @ ws[num_down + 1] + b_attn
    h = jnp.maximum((attn + iud) @ ws[num_down + 2] + b_f1, 0.0)
    return h @ ws[num_down + 3] + b_f2


# ----------------------------------------------------------------------------
if __name__ == "__main__":
    B, IN_F, OUT_F, NUM_NODES = 8, 32, 16, 3
    params = init_down_triangle(seed=0, in_features=IN_F, out_features=OUT_F,
                                num_nodes=NUM_NODES)

    key = jax.random.PRNGKey(0)
    ku, k0, k1, kc = jax.random.split(key, 4)
    input_up = jax.random.normal(ku, (B, IN_F), F32)
    input_down = [jax.random.normal(k0, (B, OUT_F), F32),
                  jax.random.normal(k1, (B, OUT_F), F32)]
    ctx = jax.random.normal(kc, (B, IN_F), F32)   # unused by forward, per spec

    fwd = jax.jit(down_triangle_fwd)
    out = jax.block_until_ready(fwd(params, input_up, input_down, ctx))

    assert out.shape == (B, OUT_F)
    assert bool(jnp.all(jnp.isfinite(out)))
    ref = down_triangle_ref(params, input_up, input_down, ctx)
    np.testing.assert_allclose(np.asarray(out), np.asarray(ref),
                               rtol=1e-3, atol=1e-3)
    print("KERNEL_OK")
</pallas_src>

<mosaic_0001>
module attributes {stable_mosaic.version = 11 : i64} {
  func.func @_down_triangle_kernel(%arg0: memref<8x32xf32, #tpu.memory_space<vmem>>, %arg1: memref<8x16xf32, #tpu.memory_space<vmem>>, %arg2: memref<8x16xf32, #tpu.memory_space<vmem>>, %arg3: memref<32x16xf32, #tpu.memory_space<vmem>>, %arg4: memref<6x16x16xf32, #tpu.memory_space<vmem>>, %arg5: memref<9x16xf32, #tpu.memory_space<vmem>>, %arg6: memref<8x16xf32, #tpu.memory_space<vmem>>) attributes {dimension_semantics = [], scalar_prefetch = 0 : i64, scratch_operands = 0 : i64, tpu.core_type = #tpu.core_type<tc>} {
    %c0 = arith.constant 0 : index
    %c0_0 = arith.constant 0 : index
    %0 = vector.load %arg5[%c0, %c0_0] : memref<9x16xf32, #tpu.memory_space<vmem>>, vector<9x16xf32>
    %1 = vector.extract_strided_slice %0 {offsets = [0, 0], sizes = [1, 16], strides = [1, 1]} : vector<9x16xf32> to vector<1x16xf32>
    %2 = vector.extract_strided_slice %0 {offsets = [1, 0], sizes = [1, 16], strides = [1, 1]} : vector<9x16xf32> to vector<1x16xf32>
    %3 = vector.extract_strided_slice %0 {offsets = [2, 0], sizes = [1, 16], strides = [1, 1]} : vector<9x16xf32> to vector<1x16xf32>
    %4 = vector.extract_strided_slice %0 {offsets = [3, 0], sizes = [1, 16], strides = [1, 1]} : vector<9x16xf32> to vector<1x16xf32>
    %5 = vector.extract_strided_slice %0 {offsets = [4, 0], sizes = [1, 16], strides = [1, 1]} : vector<9x16xf32> to vector<1x16xf32>
    %6 = vector.extract_strided_slice %0 {offsets = [5, 0], sizes = [1, 16], strides = [1, 1]} : vector<9x16xf32> to vector<1x16xf32>
    %7 = vector.extract_strided_slice %0 {offsets = [6, 0], sizes = [1, 16], strides = [1, 1]} : vector<9x16xf32> to vector<1x16xf32>
    %8 = vector.extract_strided_slice %0 {offsets = [7, 0], sizes = [1, 16], strides = [1, 1]} : vector<9x16xf32> to vector<1x16xf32>
    %9 = vector.extract_strided_slice %0 {offsets = [8, 0], sizes = [1, 16], strides = [1, 1]} : vector<9x16xf32> to vector<1x16xf32>
    %c0_1 = arith.constant 0 : index
    %c0_2 = arith.constant 0 : index
    %10 = vector.load %arg0[%c0_1, %c0_2] : memref<8x32xf32, #tpu.memory_space<vmem>>, vector<8x32xf32>
    %c0_3 = arith.constant 0 : index
    %c0_4 = arith.constant 0 : index
    %11 = vector.load %arg3[%c0_3, %c0_4] : memref<32x16xf32, #tpu.memory_space<vmem>>, vector<32x16xf32>
    %cst = arith.constant dense<0.000000e+00> : vector<8x16xf32>
    %12 = tpu.matmul %10, %11, %cst {dimension_numbers = #tpu.dot_dimension_numbers<[1], [0], [0], [1], [0, 0, 1, 1], [], []>} : vector<8x32xf32>, vector<32x16xf32>, vector<8x16xf32> -> vector<8x16xf32>
    %13 = vector.broadcast %1 : vector<1x16xf32> to vector<8x16xf32>
    %14 = arith.addf %12, %13 : vector<8x16xf32>
    %cst_5 = arith.constant dense<0.000000e+00> : vector<8xf32>
    %15 = vector.multi_reduction <add>, %14, %cst_5 [1] : vector<8x16xf32> to vector<8xf32>
    %16 = vector.shape_cast %15 : vector<8xf32> to vector<8x1xf32>
    %cst_6 = arith.constant 1.600000e+01 : f32
    %17 = vector.broadcast %cst_6 : f32 to vector<8x1xf32>
    %18 = arith.divf %16, %17 : vector<8x1xf32>
    %19 = vector.broadcast %18 : vector<8x1xf32> to vector<8x16xf32>
    %20 = arith.subf %14, %19 : vector<8x16xf32>
    %21 = arith.mulf %20, %20 : vector<8x16xf32>
    %cst_7 = arith.constant dense<0.000000e+00> : vector<8xf32>
    %22 = vector.multi_reduction <add>, %21, %cst_7 [1] : vector<8x16xf32> to vector<8xf32>
    %23 = vector.shape_cast %22 : vector<8xf32> to vector<8x1xf32>
    %cst_8 = arith.constant 1.600000e+01 : f32
    %24 = vector.broadcast %cst_8 : f32 to vector<8x1xf32>
    %25 = arith.divf %23, %24 : vector<8x1xf32>
    %26 = vector.broadcast %18 : vector<8x1xf32> to vector<8x16xf32>
    %27 = arith.subf %14, %26 : vector<8x16xf32>
    %cst_9 = arith.constant 9.99999974E-6 : f32
    %28 = vector.broadcast %cst_9 : f32 to vector<8x1xf32>
    %29 = arith.addf %25, %28 : vector<8x1xf32>
    %30 = math.rsqrt %29 : vector<8x1xf32>
    %31 = vector.broadcast %30 : vector<8x1xf32> to vector<8x16xf32>
    %32 = arith.mulf %27, %31 : vector<8x16xf32>
    %33 = vector.broadcast %2 : vector<1x16xf32> to vector<8x16xf32>
    %34 = arith.mulf %32, %33 : vector<8x16xf32>
    %35 = vector.broadcast %3 : vector<1x16xf32> to vector<8x16xf32>
    %36 = arith.addf %34, %35 : vector<8x16xf32>
    %cst_10 = arith.constant 0.000000e+00 : f32
    %37 = vector.broadcast %cst_10 : f32 to vector<8x16xf32>
    %38 = arith.maximumf %36, %37 : vector<8x16xf32>
    %c2 = arith.constant 2 : index
    %c0_11 = arith.constant 0 : index
    %c0_12 = arith.constant 0 : index
    %39 = vector.load %arg4[%c2, %c0_11, %c0_12] : memref<6x16x16xf32, #tpu.memory_space<vmem>>, vector<1x16x16xf32>
    %40 = vector.shape_cast %39 : vector<1x16x16xf32> to vector<16x16xf32>
    %cst_13 = arith.constant dense<0.000000e+00> : vector<8x16xf32>
    %41 = tpu.matmul %38, %40, %cst_13 {dimension_numbers = #tpu.dot_dimension_numbers<[1], [0], [0], [1], [0, 0, 1, 1], [], []>} : vector<8x16xf32>, vector<16x16xf32>, vector<8x16xf32> -> vector<8x16xf32>
    %42 = vector.broadcast %4 : vector<1x16xf32> to vector<8x16xf32>
    %43 = arith.addf %41, %42 : vector<8x16xf32>
    %c0_14 = arith.constant 0 : index
    %c0_15 = arith.constant 0 : index
    %44 = vector.load %arg1[%c0_14, %c0_15] : memref<8x16xf32, #tpu.memory_space<vmem>>, vector<8x16xf32>
    %c0_16 = arith.constant 0 : index
    %c0_17 = arith.constant 0 : index
    %c0_18 = arith.constant 0 : index
    %45 = vector.load %arg4[%c0_16, %c0_17, %c0_18] : memref<6x16x16xf32, #tpu.memory_space<vmem>>, vector<1x16x16xf32>
    %46 = vector.shape_cast %45 : vector<1x16x16xf32> to vector<16x16xf32>
    %cst_19 = arith.constant dense<0.000000e+00> : vector<8x16xf32>
    %47 = tpu.matmul %44, %46, %cst_19 {dimension_numbers = #tpu.dot_dimension_numbers<[1], [0], [0], [1], [0, 0, 1, 1], [], []>} : vector<8x16xf32>, vector<16x16xf32>, vector<8x16xf32> -> vector<8x16xf32>
    %48 = arith.addf %43, %47 : vector<8x16xf32>
    %c0_20 = arith.constant 0 : index
    %c0_21 = arith.constant 0 : index
    %49 = vector.load %arg2[%c0_20, %c0_21] : memref<8x16xf32, #tpu.memory_space<vmem>>, vector<8x16xf32>
    %c1 = arith.constant 1 : index
    %c0_22 = arith.constant 0 : index
    %c0_23 = arith.constant 0 : index
    %50 = vector.load %arg4[%c1, %c0_22, %c0_23] : memref<6x16x16xf32, #tpu.memory_space<vmem>>, vector<1x16x16xf32>
    %51 = vector.shape_cast %50 : vector<1x16x16xf32> to vector<16x16xf32>
    %cst_24 = arith.constant dense<0.000000e+00> : vector<8x16xf32>
    %52 = tpu.matmul %49, %51, %cst_24 {dimension_numbers = #tpu.dot_dimension_numbers<[1], [0], [0], [1], [0, 0, 1, 1], [], []>} : vector<8x16xf32>, vector<16x16xf32>, vector<8x16xf32> -> vector<8x16xf32>
    %53 = arith.addf %48, %52 : vector<8x16xf32>
    %cst_25 = arith.constant dense<0.000000e+00> : vector<8xf32>
    %54 = vector.multi_reduction <add>, %53, %cst_25 [1] : vector<8x16xf32> to vector<8xf32>
    %55 = vector.shape_cast %54 : vector<8xf32> to vector<8x1xf32>
    %cst_26 = arith.constant 1.600000e+01 : f32
    %56 = vector.broadcast %cst_26 : f32 to vector<8x1xf32>
    %57 = arith.divf %55, %56 : vector<8x1xf32>
    %58 = vector.broadcast %57 : vector<8x1xf32> to vector<8x16xf32>
    %59 = arith.subf %53, %58 : vector<8x16xf32>
    %60 = arith.mulf %59, %59 : vector<8x16xf32>
    %cst_27 = arith.constant dense<0.000000e+00> : vector<8xf32>
    %61 = vector.multi_reduction <add>, %60, %cst_27 [1] : vector<8x16xf32> to vector<8xf32>
    %62 = vector.shape_cast %61 : vector<8xf32> to vector<8x1xf32>
    %cst_28 = arith.constant 1.600000e+01 : f32
    %63 = vector.broadcast %cst_28 : f32 to vector<8x1xf32>
    %64 = arith.divf %62, %63 : vector<8x1xf32>
    %65 = vector.broadcast %57 : vector<8x1xf32> to vector<8x16xf32>
    %66 = arith.subf %53, %65 : vector<8x16xf32>
    %cst_29 = arith.constant 9.99999974E-6 : f32
    %67 = vector.broadcast %cst_29 : f32 to vector<8x1xf32>
    %68 = arith.addf %64, %67 : vector<8x1xf32>
    %69 = math.rsqrt %68 : vector<8x1xf32>
    %70 = vector.broadcast %69 : vector<8x1xf32> to vector<8x16xf32>
    %71 = arith.mulf %66, %70 : vector<8x16xf32>
    %72 = vector.broadcast %5 : vector<1x16xf32> to vector<8x16xf32>
    %73 = arith.mulf %71, %72 : vector<8x16xf32>
    %74 = vector.broadcast %6 : vector<1x16xf32> to vector<8x16xf32>
    %75 = arith.addf %73, %74 : vector<8x16xf32>
    %cst_30 = arith.constant 0.000000e+00 : f32
    %76 = vector.broadcast %cst_30 : f32 to vector<8x16xf32>
    %77 = arith.maximumf %75, %76 : vector<8x16xf32>
    %c3 = arith.constant 3 : index
    %c0_31 = arith.constant 0 : index
    %c0_32 = arith.constant 0 : index
    %78 = vector.load %arg4[%c3, %c0_31, %c0_32] : memref<6x16x16xf32, #tpu.memory_space<vmem>>, vector<1x16x16xf32>
    %79 = vector.shape_cast %78 : vector<1x16x16xf32> to vector<16x16xf32>
    %cst_33 = arith.constant dense<0.000000e+00> : vector<8x16xf32>
    %80 = tpu.matmul %77, %79, %cst_33 {dimension_numbers = #tpu.dot_dimension_numbers<[1], [0], [0], [1], [0, 0, 1, 1], [], []>} : vector<8x16xf32>, vector<16x16xf32>, vector<8x16xf32> -> vector<8x16xf32>
    %81 = vector.broadcast %7 : vector<1x16xf32> to vector<8x16xf32>
    %82 = arith.addf %80, %81 : vector<8x16xf32>
    %83 = arith.addf %82, %38 : vector<8x16xf32>
    %c4 = arith.constant 4 : index
    %c0_34 = arith.constant 0 : index
    %c0_35 = arith.constant 0 : index
    %84 = vector.load %arg4[%c4, %c0_34, %c0_35] : memref<6x16x16xf32, #tpu.memory_space<vmem>>, vector<1x16x16xf32>
    %85 = vector.shape_cast %84 : vector<1x16x16xf32> to vector<16x16xf32>
    %cst_36 = arith.constant dense<0.000000e+00> : vector<8x16xf32>
    %86 = tpu.matmul %83, %85, %cst_36 {dimension_numbers = #tpu.dot_dimension_numbers<[1], [0], [0], [1], [0, 0, 1, 1], [], []>} : vector<8x16xf32>, vector<16x16xf32>, vector<8x16xf32> -> vector<8x16xf32>
    %87 = vector.broadcast %8 : vector<1x16xf32> to vector<8x16xf32>
    %88 = arith.addf %86, %87 : vector<8x16xf32>
    %cst_37 = arith.constant 0.000000e+00 : f32
    %89 = vector.broadcast %cst_37 : f32 to vector<8x16xf32>
    %90 = arith.maximumf %88, %89 : vector<8x16xf32>
    %c5 = arith.constant 5 : index
    %c0_38 = arith.constant 0 : index
    %c0_39 = arith.constant 0 : index
    %91 = vector.load %arg4[%c5, %c0_38, %c0_39] : memref<6x16x16xf32, #tpu.memory_space<vmem>>, vector<1x16x16xf32>
    %92 = vector.shape_cast %91 : vector<1x16x16xf32> to vector<16x16xf32>
    %cst_40 = arith.constant dense<0.000000e+00> : vector<8x16xf32>
    %93 = tpu.matmul %90, %92, %cst_40 {dimension_numbers = #tpu.dot_dimension_numbers<[1], [0], [0], [1], [0, 0, 1, 1], [], []>} : vector<8x16xf32>, vector<16x16xf32>, vector<8x16xf32> -> vector<8x16xf32>
    %94 = vector.broadcast %9 : vector<1x16xf32> to vector<8x16xf32>
    %95 = arith.addf %93, %94 : vector<8x16xf32>
    %c0_41 = arith.constant 0 : index
    %c0_42 = arith.constant 0 : index
    %96 = vector.load %arg6[%c0_41, %c0_42] : memref<8x16xf32, #tpu.memory_space<vmem>>, vector<8x16xf32>
    tpu.vector_store %arg6[%c0_41, %c0_42], %95 {strides = array<i32>} : memref<8x16xf32, #tpu.memory_space<vmem>>, vector<8x16xf32>,
    return
  }
}

</mosaic_0001>

<bundles_post_ra>
// kernel: down_triangle_fwd.1
= control target key start
LH: loop header
LB: loop body
LE: loop exit
PB: predicated region body
PF: predicated region fallthrough
CT: control target
= control target key end

     0   :  { %11 = vsyncpa [#allocation3], 0  ;;  %s984_s0 = inlined_call_operand.vmem [shape: f32[8,32], index: 0, kind: input, shape index: {}]   ;;  %s985_s1 = inlined_call_operand.vmem [shape: f32[8,16], index: 1, kind: input, shape index: {}]   ;;  %s986_s2 = inlined_call_operand.vmem [shape: f32[8,16], index: 2, kind: input, shape index: {}]   ;;  %s987_s3 = inlined_call_operand.vmem [shape: f32[32,16], index: 3, kind: input, shape index: {}]   ;;  %s988_s4 = inlined_call_operand.hbm [shape: f32[6,16,16], index: 4, kind: input, shape index: {}]   ;;  %s989_s5 = inlined_call_operand.vmem [shape: f32[9,16], index: 5, kind: input, shape index: {}]   ;;  %s990_s6 = inlined_call_operand.hbm [shape: f32[8,16], index: 6, kind: output, shape index: {}]  }
   0x1   :  { %12 = vsyncpa [#allocation4], 0  ;;  %s838_s21 = smov [#allocation2]   ;;  %s790_s25 = scalar_lea.hbm %s988_s4, 1536 }
   0x2   :  { %s26_s22 = sshll.u32 %s838_s21, 4  ;;  %p791_p0 = scmp.ne.s32.totalorder %s988_s4, %s790_s25  ;;  %s27_s22 = int_to_ptr.vmem [resolvable:$true] %s26_s22 }
   0x3   :  { %p794_p1 = scmp.lt.u32.totalorder %s790_s25, %s988_s4 }
   0x5   :  { %p796_p2 = pnand %p794_p1, %p791_p0 }
   0x7   :  { %799 = shalt.err (!%p796_p2)
}
   0x8   :  { %s800_s30 = scalar_lea.vmem %s27_s22, 1536  ;;  %p805_p4 = scmp.lt.s32.totalorder %s27_s22, %s27_s22 }
   0x9   :  { %p801_p3 = scmp.ne.s32.totalorder %s27_s22, %s800_s30  ;;  %p806_p5 = scmp.lt.s32.totalorder %s800_s30, %s800_s30 }
   0xb   :  { %p807_p6 = por %p806_p5, %p805_p4 }
   0xd   :  { %p808_p7 = pnand %p807_p6, %p801_p3 }
   0xf   :  { %811 = shalt.err (!%p808_p7)
}
  0x10   :  { %s839_s7 = smov 128   ;;  %s840_s8 = smov 8  }
  0x11   :  { %32 = dma.hbm_to_vmem [thread:$0]  %s988_s4, 1536, %s27_s22, [#allocation3], %s839_s7, %s839_s7, %s840_s8  }
  0x12   :  { %834 = dma.done.wait [#allocation3], 1536  }
  0x13   :  { %835 = vsyncadd [#allocation3], 4294965760  ;;  %v841_v0 = vmov 0.0|0.0   ;;  %vm842_vm0 = vmmov 0   ;;  %v843_v1 = vmov 0.0   ;;  %v41_v2 = vld [vmem:[%s987_s3] sm:$0xff]  ;;  %v45_v9 = vlaneseq }
  0x14   :  { %750 = vmatprep.subr.bf16.mxu0 %v841_v0  ;;  %705 = vmatprep.mubr.msk.f32.mxu0 %vm842_vm0, %v843_v1  ;;  %v42_v3 = vld [vmem:[%s987_s3 + $0x8] sm:$0xff]  ;;  %v43_v4 = vld [vmem:[%s987_s3 + $0x10] sm:$0xff]  ;;  %v44_v6 = vld [vmem:[%s987_s3 + $0x18] sm:$0xff]  ;;  %vm49_vm1 = vcmask 261120   ;;  %vm123_vm2 = vcmask 130048   ;;  %s844_s24 = smov [#allocation5]  }
  0x15   :  { %756 = vmatprep.subr.bf16.mxu1 %v841_v0  ;;  %712 = vmatprep.mubr.msk.f32.mxu1 %vm842_vm0, %v843_v1  ;;  %v751_v5 = vpack.c.bf16 %v42_v3, %v41_v2  ;;  %v754_v7 = vpack.c.bf16 %v44_v6, %v43_v4  ;;  %v40_v8 = vld [vmem:[%s984_s0] sm:$0xff]  ;;  %v917_v10 = vshrl.u32 %v45_v9, 7  ;;  %v151_v24 = vld [vmem:[#allocation2 + $0x28] sm:$0xff]  ;;  %v308_v41 = vld [vmem:[#allocation2 + $0x10] sm:$0xff]  ;;  %s657_s25 = sshll.u32 %s844_s24, 4  ;;  %s658_s25 = int_to_ptr.vmem [resolvable:$true] %s657_s25 }
  0x16   :  { %v923_v12 = vld [vmem:[%s989_s5] sm:$0xff]  ;;  %v231_v37 = vld [vmem:[#allocation2 + $0x8] sm:$0xff]  ;;  %v309_v42 = vld [vmem:[#allocation2 + $0x18] sm:$0xff]  ;;  %s812_s26 = scalar_lea.vmem %s658_s25, 128  ;;  %p817_p9 = scmp.lt.s32.totalorder %s658_s25, %s658_s25 }
  0x17   :  { %752 = vmatpush3.bf16.msra.mxu0 %v751_v5  ;;  %v47_v11 = vsub.s32 0, %v917_v10  ;;  %v150_v23 = vld [vmem:[#allocation2 + $0x20] sm:$0xff]  ;;  %v140_v29 = vsub.s32 1, %v917_v10  ;;  %v145_v30 = vsub.s32 2, %v917_v10  ;;  %v763_v44 = vpack.c.bf16 %v309_v42, %v308_v41  ;;  %v409_v57 = vld [vmem:[#allocation2 + $0x30] sm:$0xff]  ;;  %v410_v58 = vld [vmem:[#allocation2 + $0x38] sm:$0xff]  ;;  %p813_p8 = scmp.ne.s32.totalorder %s658_s25, %s812_s26  ;;  %p818_p10 = scmp.lt.s32.totalorder %s812_s26, %s812_s26 }
  0x18   :  { %753 = vmatprep.subr.bf16.mxu0 %v841_v0  ;;  %v757_v25 = vpack.c.bf16 %v151_v24, %v150_v23  ;;  %v230_v36 = vld [vmem:[#allocation2] sm:$0xff]  ;;  %v154_v46 = vsub.s32 3, %v917_v10  ;;  %v766_v59 = vpack.c.bf16 %v410_v58, %v409_v57  ;;  %v399_v63 = vsub.s32 4, %v917_v10 }
  0x19   :  { %v48_v13 = vrot.slane %v923_v12, %v47_v11  ;;  %v141_v31 = vrot.slane %v923_v12, %v140_v29  ;;  %v146_v34 = vrot.slane %v923_v12, %v145_v30  ;;  %v760_v39 = vpack.c.bf16 %v231_v37, %v230_v36  ;;  %v229_v43 = vld [vmem:[%s985_s1] sm:$0xff]  ;;  %v491_v11 = vld [vmem:[#allocation2 + $0x48] sm:$0xff]  ;;  %p819_p11 = por %p818_p10, %p817_p9 }
  0x1a   :  { %758 = vmatpush3.bf16.msra.mxu1 %v757_v25  ;;  %v306_v45 = vld [vmem:[%s986_s2] sm:$0xff]  ;;  %v155_v47 = vrot.slane %v923_v12, %v154_v46  ;;  %v404_v2 = vsub.s32 5, %v917_v10  ;;  %v400_v3 = vrot.slane %v923_v12, %v399_v63 }
  0x1b   :  { %755 = vmatpush3.bf16.msra.mxu0 %v754_v7  ;;  %759 = vmatprep.subr.bf16.mxu1 %v841_v0  ;;  %p820_p12 = pnand %p819_p11, %p813_p8 }
  0x1c   :  { %765 = vmatprep.subr.bf16.mxu0 %v841_v0  ;;  %v405_v6 = vrot.slane %v923_v12, %v404_v2 }
  0x1e   :  { %706 = vmatmul.mubr.msk.f32.vlgmr.msra.gmra.mrb[0].mxu0 %vm49_vm1, %v40_v8 }
  0x1f   :  { %733 = vmatprep.mubr.msk.f32.mxu0 %vm842_vm0, %v843_v1  ;;  %767 = vmatpush3.bf16.msra.mxu0 %v766_v59 }
  0x20   :  { %768 = vmatprep.subr.bf16.mxu0 %v841_v0 }
  0xf1   :  { %v119_v14 = vpop.f32.mrb[0].mxu0 }
  0xf2   :  { %v120_v15 = vadd.f32 %v119_v14, %v48_v13  ;;  %v707_v16 = vpop.f32.mrb[1].mxu0  ;;  %v413_v14 = vsub.s32 6, %v917_v10 }
  0xf4   :  { %v124_v17 = vsel %vm123_vm2, %v120_v15, 0.0 }
  0xf5   :  { %125 = vadd.xlane.f32.xlu0 %v124_v17 }
 0x182   :  { %v126_v18 = vpop.xlane.xlu0 %125 }
 0x183   :  { %v128_v19 = vmul.f32 0.0625, %v126_v18 }
 0x185   :  { %v129_v20 = vsub.f32 %v120_v15, %v128_v19  ;;  %v414_v15 = vrot.slane %v923_v12, %v413_v14 }
 0x187   :  { %v130_v21 = vmul.f32 %v129_v20, %v129_v20 }
 0x189   :  { %v131_v22 = vsel %vm123_vm2, %v130_v21, 0.0  ;;  %v572_v21 = vld [vmem:[#allocation2 + $0x58] sm:$0xff] }
 0x18a   :  { %132 = vadd.xlane.f32.xlu0 %v131_v22 }
 0x217   :  { %v133_v26 = vpop.xlane.xlu0 %132 }
 0x218   :  { %v134_v27 = vmul.f32 0.0625, %v133_v26 }
 0x21a   :  { %v135_v28 = vadd.f32 1e-05, %v134_v27 }
 0x21c   :  { %786 = vrsqrt.f32 %v135_v28  ;;  %v672_v28 = vld [vmem:[%s989_s5 + $0x8] ss:$0 sm:$0xff] }
 0x226   :  { %v787_v32 = vpop.eup %786 }
 0x227   :  { %v137_v33 = vmul.f32 %v787_v32, %v129_v20  ;;  %v571_v20 = vld [vmem:[#allocation2 + $0x50] sm:$0xff] }
 0x228   :  { %v772_v22 = vpack.c.bf16 %v572_v21, %v571_v20 }
 0x229   :  { %v142_v35 = vmul.f32 %v141_v31, %v137_v33 }
 0x22b   :  { %v147_v38 = vadd.f32 %v146_v34, %v142_v35 }
 0x22d   :  { %v148_v40 = vmax.f32 %v147_v38, 0.0 }
 0x22f   :  { %713 = vmatmul.mubr.msk.f32.vlgmr.msra.gmra.mrb[0].mxu1 %vm123_vm2, %v148_v40 }
 0x230   :  { %761 = vmatpush3.bf16.msra.mxu1 %v760_v39  ;;  %719 = vmatprep.mubr.msk.f32.mxu1 %vm842_vm0, %v843_v1 }
 0x231   :  { %762 = vmatprep.subr.bf16.mxu1 %v841_v0 }
 0x237   :  { %720 = vmatmul.mubr.msk.f32.vlgmr.msra.gmra.mrb[0].mxu1 %vm123_vm2, %v229_v43 }
 0x238   :  { %764 = vmatpush3.bf16.msra.mxu1 %v763_v44  ;;  %726 = vmatprep.mubr.msk.f32.mxu1 %vm842_vm0, %v843_v1 }
 0x239   :  { %771 = vmatprep.subr.bf16.mxu1 %v841_v0  ;;  %v490_v0 = vld [vmem:[#allocation2 + $0x40] sm:$0xff] }
 0x23a   :  { %v769_v13 = vpack.c.bf16 %v491_v11, %v490_v0 }
 0x23f   :  { %727 = vmatmul.mubr.msk.f32.vlgmr.msra.gmra.mrb[0].mxu1 %vm123_vm2, %v306_v45 }
 0x240   :  { %747 = vmatprep.mubr.msk.f32.mxu1 %vm842_vm0, %v843_v1  ;;  %773 = vmatpush3.bf16.msra.mxu1 %v772_v22 }
 0x312   :  { %v379_v48 = vpop.f32.mrb[0].mxu1 }
 0x313   :  { %v774_v49 = vadd.f32 %v379_v48, %v155_v47  ;;  %v728_v50 = vpop.f32.mrb[1].mxu1 }
 0x315   :  { %v384_v51 = vsel %vm123_vm2, %v774_v49, 0.0 }
 0x316   :  { %385 = vadd.xlane.f32.xlu1 %v384_v51 }
 0x3a3   :  { %v386_v52 = vpop.xlane.xlu1 %385 }
 0x3a4   :  { %v387_v53 = vmul.f32 0.0625, %v386_v52 }
 0x3a6   :  { %v388_v54 = vsub.f32 %v774_v49, %v387_v53 }
 0x3a8   :  { %v389_v55 = vmul.f32 %v388_v54, %v388_v54 }
 0x3aa   :  { %v390_v56 = vsel %vm123_vm2, %v389_v55, 0.0 }
 0x3ab   :  { %391 = vadd.xlane.f32.xlu1 %v390_v56 }
 0x438   :  { %v392_v60 = vpop.xlane.xlu1 %391 }
 0x439   :  { %v393_v61 = vmul.f32 0.0625, %v392_v60 }
 0x43b   :  { %v394_v62 = vadd.f32 1e-05, %v393_v61 }
 0x43d   :  { %788 = vrsqrt.f32 %v394_v62 }
 0x447   :  { %v789_v4 = vpop.eup %788 }
 0x448   :  { %v396_v5 = vmul.f32 %v789_v4, %v388_v54 }
 0x44a   :  { %v401_v7 = vmul.f32 %v400_v3, %v396_v5 }
 0x44c   :  { %v406_v8 = vadd.f32 %v405_v6, %v401_v7 }
 0x44e   :  { %v407_v9 = vmax.f32 %v406_v8, 0.0 }
 0x450   :  { %734 = vmatmul.mubr.msk.f32.vlgmr.msra.gmra.mrb[2].mxu0 %vm123_vm2, %v407_v9 }
 0x451   :  { %740 = vmatprep.mubr.msk.f32.mxu0 %vm842_vm0, %v843_v1  ;;  %770 = vmatpush3.bf16.msra.mxu0 %v769_v13  ;;  %v494_v1 = vsub.s32 7, %v917_v10 }
 0x453   :  { %v495_v23 = vrot.slane %v923_v12, %v494_v1 }
 0x523   :  { %v484_v16 = vpop.f32.mrb[2].mxu0 }
 0x524   :  { %v485_v17 = vadd.f32 %v484_v16, %v414_v15  ;;  %v735_v18 = vpop.f32.mrb[3].mxu0 }
 0x526   :  { %v488_v19 = vadd.f32 %v485_v17, %v148_v40 }
 0x528   :  { %741 = vmatmul.mubr.msk.f32.vlgmr.msra.gmra.mrb[4].mxu0 %vm123_vm2, %v488_v19 }
 0x5fb   :  { %v565_v24 = vpop.f32.mrb[4].mxu0 }
 0x5fc   :  { %v566_v25 = vadd.f32 %v565_v24, %v495_v23  ;;  %v742_v26 = vpop.f32.mrb[5].mxu0 }
 0x5fe   :  { %v569_v27 = vmax.f32 %v566_v25, 0.0 }
 0x600   :  { %748 = vmatmul.mubr.msk.f32.vlgmr.msra.gmra.mrb[2].mxu1 %vm123_vm2, %v569_v27 }
 0x6d3   :  { %v646_v29 = vpop.f32.mrb[2].mxu1 }
 0x6d4   :  { %v647_v30 = vadd.f32 %v672_v28, %v646_v29  ;;  %v749_v31 = vpop.f32.mrb[3].mxu1 }
 0x6d6   :  { %650 = vst.msk [vmem:[#allocation5] sm:$0xff] %vm123_vm2, %v647_v30 }
 0x6d7   :  { %823 = shalt.err (!%p820_p12)
}
 0x6d8   :  { %s824_s29 = scalar_lea.hbm %s990_s6, 128 }
 0x6d9   :  { %p825_p13 = scmp.ne.s32.totalorder %s990_s6, %s824_s29  ;;  %p828_p0 = scmp.lt.u32.totalorder %s824_s29, %s990_s6 }
 0x6db   :  { %p830_p1 = pnand %p828_p0, %p825_p13 }
 0x6dd   :  { %833 = shalt.err (!%p830_p1)
}
 0x6de   :  { %660 = dma.vmem_to_hbm [thread:$0]  %s658_s25, 128, %s990_s6, [#allocation4]  }
 0x6df   :  { %836 = dma.done.wait [#allocation4], 128  }
 0x6e0   :  { %837 = vsyncadd [#allocation4], 4294967168 }
 0x6e1   :  { %664 = vsyncpa [#allocation3], 1 }
 0x6e2   :  { %665 = vsyncpa [#allocation4], 1 }

</bundles_post_ra>
